<compile_context>
chip_gen: v7x
topology: tpu7x:2x2x1
jax: 0.10.0
libtpu: 0.0.40
codegen_flags: <defaults>
</compile_context>

<pallas_src>
import functools

import jax
import jax.numpy as jnp
from jax.experimental import pallas as pl
from jax.experimental.pallas import tpu as pltpu


def _round_up(x, m):
    return ((x + m - 1) // m) * m


def _round_down(x, m):
    return (x // m) * m


def _vmem_limit_bytes():
    phys = 64 * 1024 * 1024
    try:
        info = pltpu.get_tpu_info()
        phys = int(getattr(info, "vmem_capacity_bytes", phys))
    except Exception:
        pass
    # Stay well inside physical VMEM on every generation (v7x: 64 MiB total).
    return int(min(phys // 2, 32 * 1024 * 1024))


def _sinusoid_kernel(pos_ref, inv_freq_ref, out_ref, *,
                     sin_first, bsz, rows_per_step, half, fuse_store):
    """One grid step.

    pos_ref      : (TLS, rows_per_step)  f32  -- super-rows of positions
    inv_freq_ref : (1, half)             f32  -- resident across the grid
    out_ref      : (TLS, rows_per_step * bsz * 2*half)
    """
    demb = 2 * half
    inv_freq = inv_freq_ref[...]                          # (1, half)
    pieces = []
    for r in range(rows_per_step):
        # torch.ger equivalent: VPU broadcast-multiply; sin/cos on EUP/VPU.
        ang = pos_ref[:, r:r + 1] * inv_freq              # (TLS, half)
        s = jnp.sin(ang).astype(out_ref.dtype)
        c = jnp.cos(ang).astype(out_ref.dtype)
        first, second = (s, c) if sin_first else (c, s)
        if fuse_store:
            # Narrow row: assemble one lane-dense super-row, store once
            # (single unmasked vst per tile).
            for _ in range(bsz):
                pieces.append(first)
                pieces.append(second)
        else:
            # Wide row: store straight from the sin/cos vregs; no tile/concat
            # intermediate that would spill through VMEM.
            for b in range(bsz):
                base = (r * bsz + b) * demb
                out_ref[:, base:base + half] = first
                out_ref[:, base + half:base + demb] = second
    if fuse_store:
        out_ref[...] = jnp.concatenate(pieces, axis=-1)


class SinusoidalPositionalEmbedding:
    """JAX/Pallas port of the PyTorch module (forward semantics preserved)."""

    def __init__(self, demb):
        assert demb % 2 == 0, "demb must be even"
        self.demb = demb
        self.inv_freq = 1.0 / (
            10000.0 ** (jnp.arange(0.0, demb, 2.0, dtype=jnp.float32) / demb)
        )

    def __call__(self, pos_seq, sin_first=True, bsz=None,
                 out_dtype=jnp.float32, materialize_batch=True):
        pos_seq = pos_seq.astype(jnp.float32)
        L = int(pos_seq.shape[0])
        D = self.demb
        half = D // 2
        B = 1 if bsz is None else int(bsz)

        itemsize = jnp.dtype(out_dtype).itemsize
        row_mult = 8 if itemsize >= 4 else 16          # bf16 sublane packing

        vmem_limit = _vmem_limit_bytes()
        budget = (vmem_limit * 5) // 8                 # headroom for pipeline

        # ---- batch-repeat policy ------------------------------------------
        # Fold the repeat into the kernel (torch parity, lane-dense writeback)
        # unless B*D is so large that even an 8-row block would blow VMEM.
        min_rows = row_mult
        fold_cap = budget // (min_rows * (2 * itemsize + 16))
        fold_batch = materialize_batch and B > 1 and (B * D) <= fold_cap
        B_k = B if fold_batch else 1
        BD = B_k * D

        # ---- super-row packing for lane-dense stores ----------------------
        # Pick R (dividing L) so the per-super-row width R*B*D is a multiple
        # of 128 lanes; only worthwhile when the fused single store is used.
        R = 1
        if BD % 128 != 0 and L > 1:
            for r in range(2, 33):
                if (L % r == 0 and (r * BD) % 128 == 0
                        and 2 * r * B_k <= 32 and r * BD <= 1024):
                    R = r
                    break
        W = R * BD
        LS = L // R
        fuse = (2 * R * B_k <= 32) and (W <= 1024)

        # ---- rows (in super-row units) per grid step ----------------------
        bytes_per_srow = W * (2 * itemsize + 16) + 16 * R   # 2x out buf + temps
        TLS = int(budget // max(1, bytes_per_srow))
        TLS = max(row_mult, min(4096, _round_down(TLS, row_mult)))
        if LS >= 64:
            TLS = min(TLS, _round_up(pl.cdiv(LS, 4), row_mult))   # >=4 steps
        elif LS >= 2 * row_mult:
            TLS = min(TLS, _round_up(pl.cdiv(LS, 2), row_mult))   # >=2 steps (v7x)
        if TLS >= LS:
            TLS = LS                                              # full block
        grid = (pl.cdiv(LS, TLS),)

        pos_2d = pos_seq.reshape(LS, R)
        inv_freq_2d = self.inv_freq.reshape(1, half)

        kernel = functools.partial(
            _sinusoid_kernel,
            sin_first=bool(sin_first),
            bsz=B_k,
            rows_per_step=R,
            half=half,
            fuse_store=fuse,
        )

        out_flat = pl.pallas_call(
            kernel,
            out_shape=jax.ShapeDtypeStruct((LS, W), out_dtype),
            grid_spec=pl.GridSpec(
                grid=grid,
                in_specs=[
                    pl.BlockSpec((TLS, R), lambda i: (i, 0)),      # pos tile
                    pl.BlockSpec((1, half), lambda i: (0, 0)),     # inv_freq resident
                ],
                out_specs=pl.BlockSpec((TLS, W), lambda i: (i, 0)),
            ),
            compiler_params=pltpu.CompilerParams(
                dimension_semantics=("parallel",),
                vmem_limit_bytes=int(vmem_limit),
            ),
        )(pos_2d, inv_freq_2d)

        # Free reshape of the contiguous (LS, R*B_k*D) slab -> (L, B_k, D).
        pos_emb = out_flat.reshape(L, B_k, D)
        if materialize_batch and B > 1 and not fold_batch:
            # Extreme-width fallback: repeat outside the kernel.
            pos_emb = jnp.broadcast_to(pos_emb, (L, B, D))
        # materialize_batch=False intentionally returns (L, 1, D); consumer
        # should broadcast (saves B x HBM writeback).
        return pos_emb


def _reference(pos_seq, inv_freq, sin_first=True, bsz=None):
    sinusoid_inp = jnp.outer(pos_seq, inv_freq)
    if sin_first:
        pos_emb = jnp.concatenate(
            [jnp.sin(sinusoid_inp), jnp.cos(sinusoid_inp)], axis=-1)
    else:
        pos_emb = jnp.concatenate(
            [jnp.cos(sinusoid_inp), jnp.sin(sinusoid_inp)], axis=-1)
    if bsz is not None:
        return jnp.repeat(pos_emb[:, None, :], bsz, axis=1)
    return pos_emb[:, None, :]


if __name__ == "__main__":
    key = jax.random.PRNGKey(0)

    # ---- case 1: narrow D (fused lane-dense super-row path), bsz given ----
    demb, seq_len, bsz = 32, 8, 2
    module = SinusoidalPositionalEmbedding(demb)
    base = jnp.arange(seq_len, dtype=jnp.float32) - (seq_len // 2)
    jitter = jax.random.normal(key, (seq_len,), dtype=jnp.float32) * 0.25
    pos_seq = base + jitter

    out1 = module(pos_seq, sin_first=True, bsz=bsz)
    out2 = module(pos_seq, sin_first=False, bsz=None)
    jax.block_until_ready(out1)
    jax.block_until_ready(out2)

    ref1 = _reference(pos_seq, module.inv_freq, sin_first=True, bsz=bsz)
    ref2 = _reference(pos_seq, module.inv_freq, sin_first=False, bsz=None)
    assert out1.shape == (seq_len, bsz, demb)
    assert out2.shape == (seq_len, 1, demb)
    assert jnp.allclose(out1, ref1, atol=1e-6)
    assert jnp.allclose(out2, ref2, atol=1e-6)

    # ---- case 2: wide row (per-slice direct-store path), multi-step grid ---
    demb2, seq_len2, bsz2 = 256, 16, 8
    module2 = SinusoidalPositionalEmbedding(demb2)
    key2 = jax.random.PRNGKey(0)
    pos_seq2 = jax.random.normal(key2, (seq_len2,), dtype=jnp.float32) * 4.0

    out3 = module2(pos_seq2, sin_first=True, bsz=bsz2)
    jax.block_until_ready(out3)
    ref3 = _reference(pos_seq2, module2.inv_freq, sin_first=True, bsz=bsz2)
    assert out3.shape == (seq_len2, bsz2, demb2)
    assert jnp.allclose(out3, ref3, atol=1e-6)

    print("KERNEL_OK")
</pallas_src>

<mosaic_0001>
module attributes {stable_mosaic.version = 11 : i64} {
  func.func @_sinusoid_kernel(%arg0: i32, %arg1: memref<4x2xf32, #tpu.memory_space<vmem>>, %arg2: memref<1x16xf32, #tpu.memory_space<vmem>>, %arg3: memref<4x128xf32, #tpu.memory_space<vmem>>) attributes {dimension_semantics = [#tpu.dimension_semantics<parallel>], iteration_bounds = array<i64: 1>, scalar_prefetch = 0 : i64, scratch_operands = 0 : i64, tpu.core_type = #tpu.core_type<tc>, window_params = [{transform_indices = @transform_0, window_bounds = array<i64: 4, 2>}, {pipeline_mode = #tpu.pipeline_mode<synchronous>, transform_indices = @transform_1, window_bounds = array<i64: 1, 16>}, {transform_indices = @transform_2, window_bounds = array<i64: 4, 128>}]} {
    %c0 = arith.constant 0 : index
    %c0_0 = arith.constant 0 : index
    %0 = vector.load %arg2[%c0, %c0_0] : memref<1x16xf32, #tpu.memory_space<vmem>>, vector<1x16xf32>
    %c0_1 = arith.constant 0 : index
    %c0_2 = arith.constant 0 : index
    %1 = vector.load %arg1[%c0_1, %c0_2] : memref<4x2xf32, #tpu.memory_space<vmem>>, vector<4x1xf32>
    %2 = vector.broadcast %1 : vector<4x1xf32> to vector<4x16xf32>
    %3 = vector.broadcast %0 : vector<1x16xf32> to vector<4x16xf32>
    %4 = arith.mulf %2, %3 : vector<4x16xf32>
    %5 = math.sin %4 : vector<4x16xf32>
    %6 = math.cos %4 : vector<4x16xf32>
    %c0_3 = arith.constant 0 : index
    %c1 = arith.constant 1 : index
    %7 = vector.load %arg1[%c0_3, %c1] : memref<4x2xf32, #tpu.memory_space<vmem>>, vector<4x1xf32>
    %8 = vector.broadcast %7 : vector<4x1xf32> to vector<4x16xf32>
    %9 = vector.broadcast %0 : vector<1x16xf32> to vector<4x16xf32>
    %10 = arith.mulf %8, %9 : vector<4x16xf32>
    %11 = math.sin %10 : vector<4x16xf32>
    %12 = math.cos %10 : vector<4x16xf32>
    %13 = tpu.concatenate %5, %6, %5, %6, %11, %12, %11, %12 in 1 : vector<4x16xf32>, vector<4x16xf32>, vector<4x16xf32>, vector<4x16xf32>, vector<4x16xf32>, vector<4x16xf32>, vector<4x16xf32>, vector<4x16xf32> -> vector<4x128xf32>
    %c0_4 = arith.constant 0 : index
    %c0_5 = arith.constant 0 : index
    %14 = vector.load %arg3[%c0_4, %c0_5] : memref<4x128xf32, #tpu.memory_space<vmem>>, vector<4x128xf32>
    tpu.vector_store %arg3[%c0_4, %c0_5], %13 {strides = array<i32>} : memref<4x128xf32, #tpu.memory_space<vmem>>, vector<4x128xf32>,
    return
  }
  func.func @transform_0(%arg0: i32) -> (i32, i32) {
    %c0_i32 = arith.constant 0 : i32
    %c0_i32_0 = arith.constant 0 : i32
    return %arg0, %c0_i32 : i32, i32
  }
  func.func @transform_1(%arg0: i32) -> (i32, i32) {
    %c0_i32 = arith.constant 0 : i32
    %c0_i32_0 = arith.constant 0 : i32
    %c0_i32_1 = arith.constant 0 : i32
    return %c0_i32, %c0_i32_0 : i32, i32
  }
  func.func @transform_2(%arg0: i32) -> (i32, i32) {
    %c0_i32 = arith.constant 0 : i32
    %c0_i32_0 = arith.constant 0 : i32
    return %arg0, %c0_i32 : i32, i32
  }
}

</mosaic_0001>

<bundles_post_ra>
// kernel: tpu_custom_call.1
= control target key start
LH: loop header
LB: loop body
LE: loop exit
PB: predicated region body
PF: predicated region fallthrough
CT: control target
= control target key end

     0   :  { %v574_v1 = vmov 0   ;;  %s717_s0 = inlined_call_operand.vmem [shape: f32[4,2], index: 0, kind: input, shape index: {}]   ;;  %s718_s1 = inlined_call_operand.vmem [shape: f32[1,16], index: 1, kind: input, shape index: {}]   ;;  %s719_s2 = inlined_call_operand.hbm [shape: f32[4,128], index: 2, kind: output, shape index: {}]  }
   0x1   :  { %v13_v0 = vld [vmem:[%s717_s0] sm:$0xf]  ;;  %540 = vset.pattern.permute.xlu0 %v574_v1 }
   0x2   :  { %16 = vperm.xlu0 %540, %v13_v0  }
   0x3   :  { %7 = vsyncpa [#allocation3], 0  ;;  %v575_v2 = vmov 1   ;;  %v499_v3 = vld [vmem:[%s718_s1] ss:$0 sm:$0xff]  ;;  %s582_s0 = smov 64  }
   0x4   :  { %v576_v26 = vmov 2102212464   ;;  %v577_v28 = vmov 920167782   ;;  %v578_v32 = vmov 1326507024  }
   0x5   :  { %v579_v36 = vmov 683565275   ;;  %v580_v38 = vmov 2475754826   ;;  %v581_v40 = vmov 2131351028  }
   0x6   :  { %541 = vset.pattern.permute.xlu0 %v575_v2  ;;  %s583_s1 = smov 96   ;;  %s584_s13 = smov 16  }
   0x7   :  { %234 = vperm.xlu0 %541, %v13_v0   ;;  %s585_s14 = smov 32   ;;  %s586_s15 = smov 48  }
   0x8   :  { %s587_s16 = smov 80   ;;  %s588_s17 = smov 112  }
   0x9   :  { %s589_s18 = smov [#allocation2]  }
   0xa   :  { %s491_s19 = sshll.u32 %s589_s18, 4  ;;  %s492_s19 = int_to_ptr.vmem [resolvable:$true] %s491_s19 }
   0xb   :  { %s550_s20 = scalar_lea.vmem %s492_s19, 64  ;;  %p555_p1 = scmp.lt.s32.totalorder %s492_s19, %s492_s19 }
   0xc   :  { %p551_p0 = scmp.ne.s32.totalorder %s492_s19, %s550_s20  ;;  %p556_p2 = scmp.lt.s32.totalorder %s550_s20, %s550_s20 }
   0xe   :  { %p557_p3 = por %p556_p2, %p555_p1 }
  0x10   :  { %p558_p4 = pnand %p557_p3, %p551_p0 }
  0x81   :  { %v17_v4 = vpop.permute.xlu0 %16 }
  0x82   :  { %v611_v5 = vmul.f32 %v499_v3, %v17_v4 }
  0x84   :  { %v29_v6 = vand.u32 2139095040, %v611_v5  ;;  %v26_v11 = vand.u32 2147483647, %v611_v5 }
  0x86   :  { %v30_v7 = vshrl.u32 %v29_v6, 23  ;;  %v235_v8 = vpop.permute.xlu0 %234  ;;  %v623_v17 = vand.u32 8388607, %v26_v11 }
  0x87   :  { %v614_v9 = vmul.f32 %v499_v3, %v235_v8 }
  0x88   :  { %v500_v10 = vadd.s32 4294967169, %v30_v7  ;;  %v34_v25 = vor.u32 8388608, %v623_v17 }
  0x89   :  { %v238_v12 = vand.u32 2147483647, %v614_v9  ;;  %v241_v13 = vand.u32 2139095040, %v614_v9  ;;  %vm240_vm14 = vcmp.lt.s32.totalorder %v614_v9, 0 }
  0x8a   :  { %v36_v14 = vadd.s32 1, %v500_v10 }
  0x8b   :  { %v242_v15 = vshrl.u32 %v241_v13, 23  ;;  %v245_v16 = vand.u32 8388607, %v238_v12  ;;  %vm239_vm15 = vcmp.le.f32.partialorder %v238_v12, 0.7853982 }
  0x8c   :  { %vm37_vm0 = vcmp.gt.s32.totalorder %v36_v14, 0 }
  0x8d   :  { %v38_v18 = vsel %vm37_vm0, %v36_v14, 0  ;;  %v508_v19 = vadd.s32 4294967169, %v242_v15  ;;  %v246_v20 = vor.u32 8388608, %v245_v16  ;;  %vm28_vm0 = vcmp.lt.s32.totalorder %v611_v5, 0 }
  0x8e   :  { %v625_v21 = vshrl.u32 %v38_v18, 5  ;;  %v40_v22 = vand.u32 31, %v38_v18 }
  0x8f   :  { %v248_v23 = vadd.s32 1, %v508_v19  ;;  %v630_v30 = vshll.u32 %v246_v20, 8 }
  0x90   :  { %v627_v24 = vsub.s32 32, %v40_v22  ;;  %v52_v27 = vshll.u32 %v576_v26, %v40_v22  ;;  %v55_v29 = vshll.u32 %v577_v28, %v40_v22  ;;  %vm61_vm2 = vcmp.lt.s32.totalorder %v625_v21, 4 }
  0x91   :  { %vm249_vm1 = vcmp.gt.s32.totalorder %v248_v23, 0  ;;  %v43_v37 = vshll.u32 %v579_v36, %v40_v22  ;;  %v46_v39 = vshll.u32 %v580_v38, %v40_v22  ;;  %v49_v41 = vshll.u32 %v581_v40, %v40_v22 }
  0x92   :  { %v53_v31 = vshrl.u32 %v577_v28, %v627_v24  ;;  %v56_v33 = vshrl.u32 %v578_v32, %v627_v24  ;;  %v250_v34 = vsel %vm249_vm1, %v248_v23, 0  ;;  %v44_v44 = vshrl.u32 %v580_v38, %v627_v24 }
  0x93   :  { %v252_v35 = vand.u32 31, %v250_v34  ;;  %v251_v43 = vshrl.u32 %v250_v34, 5  ;;  %v47_v45 = vshrl.u32 %v581_v40, %v627_v24  ;;  %v50_v53 = vshrl.u32 %v576_v26, %v627_v24 }
  0x94   :  { %v54_v42 = vor.u32 %v53_v31, %v52_v27  ;;  %v57_v50 = vor.u32 %v56_v33, %v55_v29  ;;  %vm58_vm3 = vcmp.lt.s32.totalorder %v625_v21, 1  ;;  %v45_v2 = vor.u32 %v44_v44, %v43_v37 }
  0x95   :  { %v253_v46 = vsub.s32 32, %v252_v35  ;;  %v255_v47 = vshll.u32 %v579_v36, %v252_v35  ;;  %v258_v48 = vshll.u32 %v580_v38, %v252_v35  ;;  %v261_v49 = vshll.u32 %v581_v40, %v252_v35 }
  0x96   :  { %v264_v51 = vshll.u32 %v576_v26, %v252_v35  ;;  %v267_v52 = vshll.u32 %v577_v28, %v252_v35  ;;  %v67_v58 = vsel %vm61_vm2, %v54_v42, 920167782  ;;  %vm270_vm4 = vcmp.lt.s32.totalorder %v251_v43, 1 }
  0x97   :  { %v254_v54 = vshrl.u32 %v579_v36, %v253_v46  ;;  %v256_v55 = vshrl.u32 %v580_v38, %v253_v46  ;;  %v259_v56 = vshrl.u32 %v581_v40, %v253_v46  ;;  %v262_v57 = vshrl.u32 %v576_v26, %v253_v46 }
  0x98   :  { %v265_v59 = vshrl.u32 %v577_v28, %v253_v46  ;;  %v268_v60 = vshrl.u32 %v578_v32, %v253_v46  ;;  %vm272_vm5 = vcmp.lt.s32.totalorder %v251_v43, 3  ;;  %vm273_vm6 = vcmp.lt.s32.totalorder %v251_v43, 4 }
  0x99   :  { %v257_v61 = vor.u32 %v256_v55, %v255_v47  ;;  %v260_v62 = vor.u32 %v259_v56, %v258_v48  ;;  %v263_v63 = vor.u32 %v262_v57, %v261_v49  ;;  %v48_v14 = vor.u32 %v47_v45, %v46_v39 }
  0x9a   :  { %v266_v0 = vor.u32 %v265_v59, %v264_v51  ;;  %v269_v1 = vor.u32 %v268_v60, %v267_v52  ;;  %vm271_vm7 = vcmp.lt.s32.totalorder %v251_v43, 2  ;;  %v51_v18 = vor.u32 %v50_v53, %v49_v41 }
  0x9b   :  { %v274_v3 = vsel %vm270_vm4, %v254_v54, %v257_v61  ;;  %v275_v4 = vsel %vm273_vm6, %v263_v63, 2102212464  ;;  %v278_v6 = vsel %vm270_vm4, %v257_v61, %v260_v62  ;;  %v282_v7 = vsel %vm270_vm4, %v260_v62, %v263_v63 }
  0x9c   :  { %v276_v8 = vsel %vm272_vm5, %v260_v62, %v275_v4  ;;  %v279_v10 = vsel %vm273_vm6, %v266_v0, 920167782  ;;  %v283_v13 = vsel %vm273_vm6, %v269_v1, 1326507024  ;;  %v71_v19 = vsel %vm61_vm2, %v57_v50, 1326507024 }
  0x9d   :  { %v280_v15 = vsel %vm272_vm5, %v263_v63, %v279_v10  ;;  %v284_v16 = vsel %vm272_vm5, %v266_v0, %v283_v13  ;;  %v277_v20 = vsel %vm271_vm7, %v274_v3, %v276_v8  ;;  %v42_v31 = vshrl.u32 %v579_v36, %v627_v24 }
  0x9e   :  { %v281_v22 = vsel %vm271_vm7, %v278_v6, %v280_v15  ;;  %v285_v23 = vsel %vm271_vm7, %v282_v7, %v284_v16  ;;  %vm60_vm8 = vcmp.lt.s32.totalorder %v625_v21, 3  ;;  %v63_v32 = vsel %vm61_vm2, %v51_v18, 2102212464 }
  0x9f   :  { %v644_v26 = vmul.u32.u64.low %v630_v30, %v285_v23  ;;  %v645_v27 = vmul.u32.u64.high %v630_v30, %v285_v23, %v644_v26  ;;  %v648_v28 = vmul.u32.u64.low %v630_v30, %v281_v22  ;;  %v649_v29 = vmul.u32.u64.high %v630_v30, %v281_v22, %v648_v28 }
  0xa0   :  { %v66_v33 = vsel %vm58_vm3, %v45_v2, %v48_v14  ;;  %vm59_vm9 = vcmp.lt.s32.totalorder %v625_v21, 2  ;;  %v68_v34 = vsel %vm60_vm8, %v51_v18, %v67_v58  ;;  %v70_v35 = vsel %vm58_vm3, %v48_v14, %v51_v18 }
  0xa1   :  { %v72_v37 = vsel %vm60_vm8, %v54_v42, %v71_v19  ;;  %v293_v24 = vmul.u32 %v630_v30, %v277_v20  ;;  %v69_v36 = vsel %vm59_vm9, %v66_v33, %v68_v34  ;;  %v74_v39 = vshll.u32 %v34_v25, 8 }
  0xa2   :  { %v73_v38 = vsel %vm59_vm9, %v70_v35, %v72_v37  ;;  %vm295_vm10 = vc.u32 %v645_v27, %v648_v28  ;;  %v296_v40 = vadd.s32 1, %v649_v29  ;;  %v62_v41 = vsel %vm58_vm3, %v42_v31, %v45_v2 }
  0xa3   :  { %v64_v42 = vsel %vm60_vm8, %v48_v14, %v63_v32  ;;  %v677_v30 = vmul.u32.u64.low %v74_v39, %v73_v38  ;;  %v678_v43 = vmul.u32.u64.high %v74_v39, %v73_v38, %v677_v30  ;;  %v294_v2 = vadd.s32 %v648_v28, %v645_v27 }
  0xa4   :  { %v680_v44 = vmul.u32.u64.low %v74_v39, %v69_v36  ;;  %v681_v45 = vmul.u32.u64.high %v74_v39, %v69_v36, %v680_v44  ;;  %v297_v46 = vsel %vm295_vm10, %v296_v40, %v649_v29  ;;  %v65_v25 = vsel %vm59_vm9, %v62_v41, %v64_v42 }
  0xa5   :  { %v298_v17 = vadd.s32 %v297_v46, %v293_v24  ;;  %v81_v49 = vmul.u32 %v74_v39, %v65_v25  ;;  %vm27_vm1 = vcmp.le.f32.partialorder %v26_v11, 0.7853982  ;;  %vm330_vm5 = vweird.f32 %v614_v9 }
  0xa6   :  { %vm83_vm11 = vc.u32 %v678_v43, %v680_v44  ;;  %v84_v48 = vadd.s32 1, %v681_v45  ;;  %v82_v16 = vadd.s32 %v680_v44, %v678_v43 }
  0xa7   :  { %v299_v47 = vadd.s32 536870912, %v298_v17 }
  0xa8   :  { %v85_v51 = vsel %vm83_vm11, %v84_v48, %v681_v45  ;;  %vm118_vm11 = vweird.f32 %v611_v5 }
  0xa9   :  { %v300_v50 = vshrl.u32 %v299_v47, 30  ;;  %v86_v52 = vadd.s32 %v85_v51, %v81_v49 }
  0xab   :  { %v301_v53 = vshll.u32 %v300_v50, 30  ;;  %v87_v54 = vadd.s32 536870912, %v86_v52  ;;  %v324_v33 = vsub.s32 4, %v300_v50 }
  0xad   :  { %v302_v55 = vsub.s32 %v298_v17, %v301_v53  ;;  %v88_v56 = vshrl.u32 %v87_v54, 30  ;;  %v325_v38 = vsel %vm240_vm14, %v324_v33, %v300_v50 }
  0xae   :  { %v327_v30 = vsel %vm239_vm15, 0, %v325_v38 }
  0xaf   :  { %v304_v57 = vsub.s32 0, %v302_v55  ;;  %v89_v58 = vshll.u32 %v88_v56, 30  ;;  %v112_v41 = vsub.s32 4, %v88_v56  ;;  %v331_v46 = vadd.s32 3, %v327_v30 }
  0xb1   :  { %v509_v59 = vmin.u32 %v304_v57, %v302_v55  ;;  %v90_v60 = vsub.s32 %v86_v52, %v89_v58  ;;  %v113_v44 = vsel %vm28_vm0, %v112_v41, %v88_v56  ;;  %v332_v17 = vand.u32 3, %v331_v46 }
  0xb2   :  { %v115_v12 = vsel %vm27_vm1, 0, %v113_v44 }
  0xb3   :  { %v306_v21 = vclz %v509_v59  ;;  %v92_v61 = vsub.s32 0, %v90_v60  ;;  %v119_v47 = vadd.s32 3, %v115_v12  ;;  %vm337_vm2 = vcmp.eq.s32.totalorder %v332_v17, 2 }
  0xb4   :  { %v223_v51 = vand.u32 3, %v115_v12  ;;  %vm334_vm3 = vcmp.eq.s32.totalorder %v332_v17, 0  ;;  %vm333_vm4 = vcmp.lt.s32.totalorder %v332_v17, 2 }
  0xb5   :  { %v510_v62 = vadd.s32 4294967294, %v306_v21  ;;  %v501_v63 = vmin.u32 %v92_v61, %v90_v60  ;;  %v120_v53 = vand.u32 3, %v119_v47 }
  0xb6   :  { %vm228_vm6 = vcmp.eq.s32.totalorder %v223_v51, 2  ;;  %vm225_vm7 = vcmp.eq.s32.totalorder %v223_v51, 0  ;;  %vm224_vm10 = vcmp.lt.s32.totalorder %v223_v51, 2 }
  0xb7   :  { %vm511_vm12 = vcmp.lt.s32.totalorder %v510_v62, 0  ;;  %v94_v1 = vclz %v501_v63  ;;  %vm122_vm8 = vcmp.eq.s32.totalorder %v120_v53, 0  ;;  %vm125_vm9 = vcmp.eq.s32.totalorder %v120_v53, 2 }
  0xb8   :  { %v309_v0 = vsel %vm511_vm12, 0, %v510_v62  ;;  %vm121_vm12 = vcmp.lt.s32.totalorder %v120_v53, 2 }
  0xb9   :  { %v310_v3 = vsub.s32 32, %v309_v0  ;;  %v314_v4 = vsub.s32 4294967266, %v309_v0  ;;  %v502_v6 = vadd.s32 4294967294, %v94_v1  ;;  %v311_v7 = vshll.u32 %v302_v55, %v309_v0 }
  0xbb   :  { %v312_v8 = vshrl.u32 %v294_v2, %v310_v3  ;;  %v315_v10 = vadd.s32 127, %v314_v4  ;;  %vm503_vm13 = vcmp.lt.s32.totalorder %v502_v6, 0  ;;  %v435_v2 = vand.u32 3, %v327_v30 }
  0xbc   :  { %v97_v15 = vsel %vm503_vm13, 0, %v502_v6 }
  0xbd   :  { %v313_v13 = vor.u32 %v312_v8, %v311_v7  ;;  %v316_v14 = vshll.u32 %v315_v10, 23  ;;  %v98_v18 = vsub.s32 32, %v97_v15  ;;  %v102_v19 = vsub.s32 4294967266, %v97_v15 }
  0xbe   :  { %v99_v22 = vshll.u32 %v90_v60, %v97_v15  ;;  %vm437_vm13 = vcmp.eq.s32.totalorder %v435_v2, 0 }
  0xbf   :  { %v317_v20 = vor.u32 4788187, %v316_v14  ;;  %v100_v23 = vshrl.u32 %v82_v16, %v98_v18  ;;  %v103_v26 = vadd.s32 127, %v102_v19  ;;  %v320_v27 = vcvt.s32.f32 %v313_v13 }
  0xc1   :  { %v318_v29 = vand.u32 2147483647, %v317_v20  ;;  %v101_v28 = vor.u32 %v100_v23, %v99_v22  ;;  %v104_v31 = vshll.u32 %v103_v26, 23 }
  0xc3   :  { %v321_v32 = vmul.f32 %v320_v27, %v318_v29  ;;  %v105_v34 = vor.u32 4788187, %v104_v31  ;;  %v108_v24 = vcvt.s32.f32 %v101_v28 }
  0xc5   :  { %v322_v35 = vxor.u32 2147483648, %v321_v32  ;;  %v106_v37 = vand.u32 2147483647, %v105_v34 }
  0xc7   :  { %v323_v36 = vsel %vm240_vm14, %v322_v35, %v321_v32  ;;  %v109_v39 = vmul.f32 %v108_v24, %v106_v37  ;;  %vm440_vm14 = vcmp.eq.s32.totalorder %v435_v2, 2 }
  0xc8   :  { %v326_v40 = vsel %vm239_vm15, %v614_v9, %v323_v36  ;;  %vm436_vm15 = vcmp.lt.s32.totalorder %v435_v2, 2 }
  0xc9   :  { %542 = vcosq.f32 %v326_v40  ;;  %v110_v42 = vxor.u32 2147483648, %v109_v39 }
  0xca   :  { %544 = vsinq.f32 %v326_v40 }
  0xcb   :  { %v111_v43 = vsel %vm28_vm0, %v110_v42, %v109_v39  ;;  %vm470_vm0 = vcmask 130048  }
  0xcc   :  { %v114_v45 = vsel %vm27_vm1, %v611_v5, %v111_v43  ;;  %vm472_vm1 = vcmask 261120  }
  0xcd   :  { %546 = vcosq.f32 %v114_v45 }
  0xce   :  { %548 = vsinq.f32 %v114_v45 }
  0xd3   :  { %v543_v25 = vpop.eup %542 }
  0xd4   :  { %v545_v48 = vpop.eup %544  ;;  %v338_v49 = vxor.u32 2147483648, %v543_v25 }
  0xd5   :  { %v335_v50 = vxor.u32 2147483648, %v545_v48 }
  0xd6   :  { %v339_v52 = vsel %vm337_vm2, %v338_v49, %v545_v48  ;;  %v442_v6 = vsel %vm440_vm14, %v338_v49, %v545_v48  ;;  %vm474_vm2 = vcmask 392192  }
  0xd7   :  { %v336_v11 = vsel %vm334_vm3, %v543_v25, %v335_v50  ;;  %v547_v54 = vpop.eup %546  ;;  %v439_v4 = vsel %vm437_vm13, %v543_v25, %v335_v50  ;;  %vm476_vm3 = vcmask 523264  }
  0xd8   :  { %v340_v55 = vsel %vm333_vm4, %v336_v11, %v339_v52  ;;  %v549_v56 = vpop.eup %548  ;;  %v126_v57 = vxor.u32 2147483648, %v547_v54  ;;  %v443_v5 = vsel %vm436_vm15, %v439_v4, %v442_v6  ;;  %vm478_vm4 = vcmask 654336  }
  0xd9   :  { %v341_v58 = vsel %vm330_vm5, nan, %v340_v55  ;;  %v123_v59 = vxor.u32 2147483648, %v549_v56  ;;  %v444_v7 = vsel %vm330_vm5, nan, %v443_v5  ;;  %vm480_vm5 = vcmask 785408  }
  0xda   :  { %457 = vrot.lane.b32.xlu0 %v341_v58, %s582_s0  ;;  %v230_v60 = vsel %vm228_vm6, %v126_v57, %v549_v56  ;;  %v127_v62 = vsel %vm125_vm9, %v126_v57, %v549_v56  ;;  %vm482_vm6 = vcmask 916480  }
  0xdb   :  { %v227_v21 = vsel %vm225_vm7, %v547_v54, %v123_v59  ;;  %v124_v61 = vsel %vm122_vm8, %v547_v54, %v123_v59 }
  0xdc   :  { %v231_v63 = vsel %vm224_vm10, %v227_v21, %v230_v60  ;;  %v128_v1 = vsel %vm121_vm12, %v124_v61, %v127_v62 }
  0xdd   :  { %v232_v0 = vsel %vm118_vm11, nan, %v231_v63  ;;  %v129_v3 = vsel %vm118_vm11, nan, %v128_v1 }
  0xde   :  { %464 = vrot.lane.b32.xlu0 %v341_v58, %s583_s1  ;;  %446 = vrot.lane.b32.xlu1 %v232_v0, %s584_s13 }
  0xe2   :  { %450 = vrot.lane.b32.xlu1 %v129_v3, %s585_s14 }
  0xe6   :  { %453 = vrot.lane.b32.xlu1 %v232_v0, %s586_s15 }
  0xea   :  { %461 = vrot.lane.b32.xlu1 %v444_v7, %s587_s16 }
  0xee   :  { %467 = vrot.lane.b32.xlu1 %v444_v7, %s588_s17 }
 0x14c   :  { %v458_v16 = vpop.permute.xlu0 %457 }
 0x150   :  { %v447_v8 = vpop.permute.xlu1 %446  ;;  %v465_v22 = vpop.permute.xlu0 %464 }
 0x151   :  { %v471_v13 = vsel %vm470_vm0, %v129_v3, %v447_v8 }
 0x154   :  { %v451_v10 = vpop.permute.xlu1 %450 }
 0x155   :  { %v473_v14 = vsel %vm472_vm1, %v471_v13, %v451_v10 }
 0x158   :  { %v454_v15 = vpop.permute.xlu1 %453 }
 0x159   :  { %v475_v18 = vsel %vm474_vm2, %v473_v14, %v454_v15 }
 0x15a   :  { %v477_v20 = vsel %vm476_vm3, %v475_v18, %v458_v16 }
 0x15c   :  { %v462_v19 = vpop.permute.xlu1 %461 }
 0x15d   :  { %v479_v9 = vsel %vm478_vm4, %v477_v20, %v462_v19 }
 0x15e   :  { %v481_v26 = vsel %vm480_vm5, %v479_v9, %v465_v22 }
 0x160   :  { %v468_v23 = vpop.permute.xlu1 %467 }
 0x161   :  { %v483_v29 = vsel %vm482_vm6, %v481_v26, %v468_v23 }
 0x162   :  { %484 = vst [vmem:[#allocation2] sm:$0xf] %v483_v29 }
 0x163   :  { %561 = shalt.err (!%p558_p4)
}
 0x164   :  { %s562_s23 = scalar_lea.hbm %s719_s2, 64 }
 0x165   :  { %p563_p5 = scmp.ne.s32.totalorder %s719_s2, %s562_s23  ;;  %p566_p6 = scmp.lt.u32.totalorder %s562_s23, %s719_s2 }
 0x167   :  { %p568_p7 = pnand %p566_p6, %p563_p5 }
 0x169   :  { %571 = shalt.err (!%p568_p7)
}
 0x16a   :  { %494 = dma.vmem_to_hbm [thread:$0]  %s492_s19, 64, %s719_s2, [#allocation3]  }
 0x16b   :  { %572 = dma.done.wait [#allocation3], 64  }
 0x16c   :  { %573 = vsyncadd [#allocation3], 4294967232 }
 0x16d   :  { %498 = vsyncpa [#allocation3], 1 }

</bundles_post_ra>
